<compile_context>
chip_gen: v6e
topology: v6e:2x2x1
jax: 0.10.0
libtpu: 0.0.40
codegen_flags: <defaults>
</compile_context>

<pallas_src>
import jax
import jax.numpy as jnp
from jax.experimental import pallas as pl
from jax.experimental.pallas import tpu as pltpu

_LANE = 128
_SMALL_CIN_VPU_THRESHOLD = 16


def _zero_conv1d_kernel(x_ref, w_ref, b_ref, o_ref):
    """out[i, o, t] = sum_c w[o, c] * x[i, c, t] + b[o].

    x_ref: (NB, C_in, TT)   w_ref: (C_out, C_in)   b_ref: (C_out, 1)
    o_ref: (NB, C_out, TT)
    """
    nb, c_in, _ = x_ref.shape
    w = w_ref[...].astype(jnp.float32)   # (C_out, C_in), tiny, resident
    b = b_ref[...].astype(jnp.float32)   # (C_out, 1)

    for i in range(nb):                  # nb is small & static -> unrolled
        xi = x_ref[i].astype(jnp.float32)          # (C_in, TT)
        if c_in <= _SMALL_CIN_VPU_THRESHOLD:
            # VPU broadcast-FMA: ~2*C_in VALU ops per output vreg, well under
            # DMA time; keeps the kernel HBM-bound and exact f32.
            acc = b + w[:, 0:1] * xi[0:1, :]
            for c in range(1, c_in):
                acc = acc + w[:, c:c + 1] * xi[c:c + 1, :]
        else:
            # Large contraction: worth the MXU.
            acc = jnp.dot(w, xi, preferred_element_type=jnp.float32) + b
        o_ref[i] = acc.astype(o_ref.dtype)


def _vmem_capacity_bytes() -> int:
    try:
        info = pltpu.get_tpu_info()
        cap = int(getattr(info, "vmem_capacity_bytes", 0))
        if cap > 0:
            return cap
    except Exception:
        pass
    return 64 * 1024 * 1024   # conservative fallback (v7x: 64 MiB / TC)


def _round_down_lane(v: int) -> int:
    return max(_LANE, (v // _LANE) * _LANE)


def _round_up_lane(v: int) -> int:
    return _LANE * (-(-v // _LANE))


def _blocking_budget(c_in: int, c_out: int, itemsize: int):
    """Max (tile_t * batch_block) columns per grid step, plus the VMEM limit."""
    vmem_cap = _vmem_capacity_bytes()
    vmem_limit = min(vmem_cap // 2, 64 * 1024 * 1024)
    # Per (batch, t) column: double-buffered in+out blocks plus ~2 f32
    # output-sized compute temporaries.
    per_col = 2 * (c_in + c_out) * itemsize + 2 * c_out * 4
    max_cols = max(_LANE, int(0.6 * vmem_limit) // per_col)
    return max_cols, vmem_limit


def _auto_tile_t(T: int, N: int, max_cols: int) -> int:
    if T <= max_cols:
        tile_t = T
    else:
        tile_t = min(_round_down_lane(max_cols), T)
    # v7x megacore: keep >= 2 grid steps when a single T step would otherwise
    # cover a single-batch problem (2 TensorCores share the "parallel" grid).
    if N == 1 and tile_t >= T and T >= 2 * _LANE:
        half = _round_up_lane(-(-T // 2))
        if half < T:
            tile_t = half
    return tile_t


def _auto_batch_block(N: int, T: int, tile_t: int, max_cols: int) -> int:
    if tile_t < T or N <= 1:
        return 1
    nb = min(N, max(1, max_cols // max(T, 1)))
    # Keep >= 2 grid steps so v7x's two TensorCores both get work.
    nb = min(nb, max(1, N // 2))
    return max(1, nb)


def zero_conv1d(x, weight, bias, *, tile_t=None, batch_block=None):
    """1x1 Conv1d: out[n, o, t] = sum_c weight[o, c] * x[n, c, t] + bias[o].

    x:      (N, C_in, T)               PyTorch NCT layout (kept, no transposes)
    weight: (C_out, C_in) or (C_out, C_in, 1)
    bias:   (C_out,)
    returns (N, C_out, T) with x.dtype.
    """
    N, C_in, T = x.shape
    C_out = bias.shape[0]
    w2d = weight.reshape(C_out, C_in)
    b2d = bias.reshape(C_out, 1)

    max_cols, vmem_limit = _blocking_budget(C_in, C_out, x.dtype.itemsize)

    if tile_t is None:
        tile_t = _auto_tile_t(T, N, max_cols)
    else:
        # Validate user-supplied tile: full extent, or a multiple of 128.
        tile_t = int(min(tile_t, T))
        if tile_t < T:
            tile_t = min(_round_down_lane(tile_t), T)
    num_t = pl.cdiv(T, tile_t)

    if batch_block is None:
        nb = _auto_batch_block(N, T, tile_t, max_cols)
    else:
        nb = max(1, min(int(batch_block), N))
    num_n = pl.cdiv(N, nb)

    cost = pl.CostEstimate(
        flops=2 * N * C_out * C_in * T + N * C_out * T,
        bytes_accessed=N * (C_in + C_out) * T * x.dtype.itemsize
        + (C_out * C_in + C_out) * w2d.dtype.itemsize,
        transcendentals=0,
    )

    return pl.pallas_call(
        _zero_conv1d_kernel,
        out_shape=jax.ShapeDtypeStruct((N, C_out, T), x.dtype),
        grid_spec=pltpu.PrefetchScalarGridSpec(
            num_scalar_prefetch=0,
            grid=(num_n, num_t),
            in_specs=[
                # x block: nb batch rows, channels full (sublanes), T tiled (lanes).
                pl.BlockSpec((nb, C_in, tile_t), lambda n, t: (n, 0, t)),
                # Weight & bias: resident across all grid steps.
                pl.BlockSpec((C_out, C_in), lambda n, t: (0, 0)),
                pl.BlockSpec((C_out, 1), lambda n, t: (0, 0)),
            ],
            out_specs=pl.BlockSpec((nb, C_out, tile_t), lambda n, t: (n, 0, t)),
        ),
        compiler_params=pltpu.CompilerParams(
            dimension_semantics=("parallel", "parallel"),
            vmem_limit_bytes=int(vmem_limit),
        ),
        cost_estimate=cost,
    )(x, w2d, b2d)


class ZeroConv1dParams:
    """Deterministic parameter setup mirroring the PyTorch __init__ (zero init)."""

    def __init__(self, in_channel, out_channel, dtype=jnp.float32):
        # nn.Conv1d(in_channel, out_channel, kernel_size=1) weight is
        # (out_channel, in_channel, 1); squeeze the kernel dim. Zero-initialized.
        self.weight = jnp.zeros((out_channel, in_channel), dtype=dtype)
        self.bias = jnp.zeros((out_channel,), dtype=dtype)

    def __call__(self, x):
        return zero_conv1d(x, self.weight, self.bias)


if __name__ == "__main__":
    key = jax.random.PRNGKey(0)
    N, C_in, C_out, T = 2, 4, 8, 16
    x = jax.random.normal(key, (N, C_in, T), dtype=jnp.float32)

    def ref_conv(xv, w, b):
        # Exact f32 reference (pure broadcast-multiply-sum, no matmul units):
        # out[n, o, t] = sum_c w[o, c] * x[n, c, t] + b[o]
        return (w[None, :, :, None] * xv[:, None, :, :]).sum(axis=2) + b[None, :, None]

    # 1) Module semantics: zero-initialized 1x1 conv -> all-zero output.
    module = ZeroConv1dParams(C_in, C_out)
    out = jax.block_until_ready(module(x))
    assert out.shape == (N, C_out, T)
    assert jnp.allclose(out, jnp.zeros((N, C_out, T), jnp.float32), atol=1e-6)

    # 2) Kernel math with non-zero params (single-step path).
    kw, kb = jax.random.split(key)
    w_rand = jax.random.normal(kw, (C_out, C_in), dtype=jnp.float32)
    b_rand = jax.random.normal(kb, (C_out,), dtype=jnp.float32)
    out2 = jax.block_until_ready(zero_conv1d(x, w_rand, b_rand))
    assert jnp.allclose(out2, ref_conv(x, w_rand, b_rand), atol=1e-5, rtol=1e-5)

    # 3) Multi-step T tiling (explicit tile_t), exact and ragged trailing tile.
    x2 = jax.random.normal(jax.random.PRNGKey(1), (N, C_in, 384), dtype=jnp.float32)
    out3 = jax.block_until_ready(zero_conv1d(x2, w_rand, b_rand, tile_t=128))
    assert jnp.allclose(out3, ref_conv(x2, w_rand, b_rand), atol=1e-5, rtol=1e-5)

    x2b = jax.random.normal(jax.random.PRNGKey(2), (N, C_in, 200), dtype=jnp.float32)
    out3b = jax.block_until_ready(zero_conv1d(x2b, w_rand, b_rand, tile_t=128))
    assert jnp.allclose(out3b, ref_conv(x2b, w_rand, b_rand), atol=1e-5, rtol=1e-5)

    # 4) Batch-blocked path (short T, several batch elements folded per step).
    x3 = jax.random.normal(jax.random.PRNGKey(3), (8, C_in, T), dtype=jnp.float32)
    out4 = jax.block_until_ready(zero_conv1d(x3, w_rand, b_rand))
    assert jnp.allclose(out4, ref_conv(x3, w_rand, b_rand), atol=1e-5, rtol=1e-5)

    print("KERNEL_OK")
</pallas_src>

<mosaic_0001>
module attributes {stable_mosaic.version = 11 : i64} {
  func.func @_zero_conv1d_kernel(%arg0: i32, %arg1: i32, %arg2: memref<1x4x16xf32, #tpu.memory_space<vmem>>, %arg3: memref<8x4xf32, #tpu.memory_space<vmem>>, %arg4: memref<8x1xf32, #tpu.memory_space<vmem>>, %arg5: memref<1x8x16xf32, #tpu.memory_space<vmem>>) attributes {dimension_semantics = [#tpu.dimension_semantics<parallel>, #tpu.dimension_semantics<parallel>], iteration_bounds = array<i64: 2, 1>, scalar_prefetch = 0 : i64, scratch_operands = 0 : i64, tpu.core_type = #tpu.core_type<tc>, window_params = [{transform_indices = @transform_0, window_bounds = array<i64: 1, 4, 16>}, {pipeline_mode = #tpu.pipeline_mode<synchronous>, transform_indices = @transform_1, window_bounds = array<i64: 8, 4>}, {pipeline_mode = #tpu.pipeline_mode<synchronous>, transform_indices = @transform_2, window_bounds = array<i64: 8, 1>}, {transform_indices = @transform_3, window_bounds = array<i64: 1, 8, 16>}]} {
    %c0 = arith.constant 0 : index
    %c0_0 = arith.constant 0 : index
    %0 = vector.load %arg3[%c0, %c0_0] : memref<8x4xf32, #tpu.memory_space<vmem>>, vector<8x4xf32>
    %c0_1 = arith.constant 0 : index
    %c0_2 = arith.constant 0 : index
    %1 = vector.load %arg4[%c0_1, %c0_2] : memref<8x1xf32, #tpu.memory_space<vmem>>, vector<8x1xf32>
    %c0_3 = arith.constant 0 : index
    %c0_4 = arith.constant 0 : index
    %c0_5 = arith.constant 0 : index
    %2 = vector.load %arg2[%c0_3, %c0_4, %c0_5] : memref<1x4x16xf32, #tpu.memory_space<vmem>>, vector<1x4x16xf32>
    %3 = vector.shape_cast %2 : vector<1x4x16xf32> to vector<4x16xf32>
    %4 = vector.extract_strided_slice %0 {offsets = [0, 0], sizes = [8, 1], strides = [1, 1]} : vector<8x4xf32> to vector<8x1xf32>
    %5 = vector.extract_strided_slice %3 {offsets = [0, 0], sizes = [1, 16], strides = [1, 1]} : vector<4x16xf32> to vector<1x16xf32>
    %6 = vector.broadcast %4 : vector<8x1xf32> to vector<8x16xf32>
    %7 = vector.broadcast %5 : vector<1x16xf32> to vector<8x16xf32>
    %8 = arith.mulf %6, %7 : vector<8x16xf32>
    %9 = vector.broadcast %1 : vector<8x1xf32> to vector<8x16xf32>
    %10 = arith.addf %9, %8 : vector<8x16xf32>
    %11 = vector.extract_strided_slice %0 {offsets = [0, 1], sizes = [8, 1], strides = [1, 1]} : vector<8x4xf32> to vector<8x1xf32>
    %12 = vector.extract_strided_slice %3 {offsets = [1, 0], sizes = [1, 16], strides = [1, 1]} : vector<4x16xf32> to vector<1x16xf32>
    %13 = vector.broadcast %11 : vector<8x1xf32> to vector<8x16xf32>
    %14 = vector.broadcast %12 : vector<1x16xf32> to vector<8x16xf32>
    %15 = arith.mulf %13, %14 : vector<8x16xf32>
    %16 = arith.addf %10, %15 : vector<8x16xf32>
    %17 = vector.extract_strided_slice %0 {offsets = [0, 2], sizes = [8, 1], strides = [1, 1]} : vector<8x4xf32> to vector<8x1xf32>
    %18 = vector.extract_strided_slice %3 {offsets = [2, 0], sizes = [1, 16], strides = [1, 1]} : vector<4x16xf32> to vector<1x16xf32>
    %19 = vector.broadcast %17 : vector<8x1xf32> to vector<8x16xf32>
    %20 = vector.broadcast %18 : vector<1x16xf32> to vector<8x16xf32>
    %21 = arith.mulf %19, %20 : vector<8x16xf32>
    %22 = arith.addf %16, %21 : vector<8x16xf32>
    %23 = vector.extract_strided_slice %0 {offsets = [0, 3], sizes = [8, 1], strides = [1, 1]} : vector<8x4xf32> to vector<8x1xf32>
    %24 = vector.extract_strided_slice %3 {offsets = [3, 0], sizes = [1, 16], strides = [1, 1]} : vector<4x16xf32> to vector<1x16xf32>
    %25 = vector.broadcast %23 : vector<8x1xf32> to vector<8x16xf32>
    %26 = vector.broadcast %24 : vector<1x16xf32> to vector<8x16xf32>
    %27 = arith.mulf %25, %26 : vector<8x16xf32>
    %28 = arith.addf %22, %27 : vector<8x16xf32>
    %c0_6 = arith.constant 0 : index
    %c0_7 = arith.constant 0 : index
    %c0_8 = arith.constant 0 : index
    %29 = vector.load %arg5[%c0_6, %c0_7, %c0_8] : memref<1x8x16xf32, #tpu.memory_space<vmem>>, vector<1x8x16xf32>
    %30 = vector.shape_cast %29 : vector<1x8x16xf32> to vector<8x16xf32>
    %31 = vector.shape_cast %28 : vector<8x16xf32> to vector<1x8x16xf32>
    tpu.vector_store %arg5[%c0_6, %c0_7, %c0_8], %31 {strides = array<i32>} : memref<1x8x16xf32, #tpu.memory_space<vmem>>, vector<1x8x16xf32>,
    return
  }
  func.func @transform_0(%arg0: i32, %arg1: i32) -> (i32, i32, i32) {
    %c0_i32 = arith.constant 0 : i32
    %c0_i32_0 = arith.constant 0 : i32
    return %arg0, %c0_i32, %arg1 : i32, i32, i32
  }
  func.func @transform_1(%arg0: i32, %arg1: i32) -> (i32, i32) {
    %c0_i32 = arith.constant 0 : i32
    %c0_i32_0 = arith.constant 0 : i32
    %c0_i32_1 = arith.constant 0 : i32
    return %c0_i32, %c0_i32_0 : i32, i32
  }
  func.func @transform_2(%arg0: i32, %arg1: i32) -> (i32, i32) {
    %c0_i32 = arith.constant 0 : i32
    %c0_i32_0 = arith.constant 0 : i32
    %c0_i32_1 = arith.constant 0 : i32
    return %c0_i32, %c0_i32_0 : i32, i32
  }
  func.func @transform_3(%arg0: i32, %arg1: i32) -> (i32, i32, i32) {
    %c0_i32 = arith.constant 0 : i32
    %c0_i32_0 = arith.constant 0 : i32
    return %arg0, %c0_i32, %arg1 : i32, i32, i32
  }
}

</mosaic_0001>

<bundles_post_ra>
// kernel: tpu_custom_call.1
= control target key start
LH: loop header
LB: loop body
LE: loop exit
PB: predicated region body
PF: predicated region fallthrough
CT: control target
= control target key end

     0   :  { %8 = vsyncpa [#allocation3], 0  ;;  %s610_s0 = inlined_call_operand.vmem [shape: f32[2,4,16], index: 0, kind: input, shape index: {}]   ;;  %s611_s1 = inlined_call_operand.vmem [shape: f32[8,4], index: 1, kind: input, shape index: {}]   ;;  %s612_s2 = inlined_call_operand.vmem [shape: f32[8,1], index: 2, kind: input, shape index: {}]   ;;  %s613_s3 = inlined_call_operand.hbm [shape: f32[2,8,16], index: 3, kind: output, shape index: {}]  }
   0x1   :  { %10 = vsyncpa [#allocation3 + $0x1], 0  ;;  %s505_s12 = smov 0   ;;  %s507_s13 = smov 0  }
   0x2   :  { %s509_s14 = smov 0   ;;  %s511_s15 = smov 0  }
   0x3   :  { %s513_s16 = smov 0   ;;  %s515_s17 = smov 0  }
   0x4 LB: > { %s328_s18 = sadd.s32 4294967295, %s478_s17   ;;  %s329_s19 = sadd.s32 4294967294, %s478_s17   ;;  %s478_s17 = sphi %s515_s17, %s16_s17   ;;  %s474_s16 = sphi %s513_s16, %s620_s16   ;;  %s470_s15 = sphi %s511_s15, %s619_s15   ;;  %s466_s14 = sphi %s509_s14, %s618_s14   ;;  %s462_s13 = sphi %s507_s13, %s617_s13   ;;  %s458_s12 = sphi %s505_s12, %s616_s12  }
   0x5   : > { %s28_s20 = sadd.s32 1, %s474_s16  ;;  %s107_s21 = sadd.s32 1, %s466_s14 }
   0x6   : > { %p30_p0 = scmp.ge.s32.totalorder %s28_s20, 2  ;;  %p117_p1 = scmp.ne.s32.totalorder %s466_s14, %s462_s13 }
   0x7   : > { %p118_p2 = scmp.eq.s32.totalorder %s328_s18, 1  ;;  %p123_p3 = scmp.ne.s32.totalorder %s462_s13, %s458_s12 }
   0x8   : > { %s622_s20 = smov (%p30_p0, %s28_s20), 0  ;;  %p124_p5 = scmp.eq.s32.totalorder %s329_s19, 1 }
   0x9   : > { %p545_p4 = por %p118_p2, %p117_p1  ;;  %s102_s23 = ssub.s32 %s474_s16, %s622_s20 }
   0xa   : > { %p332_p6 = scmp.ge.s32.totalorder %s478_s17, 1  ;;  %p105_p7 = scmp.eq.s32.totalorder %s102_s23, 0 }
   0xb   : > { %p552_p8 = por %p124_p5, %p123_p3  ;;  %p158_p9 = scmp.lt.s32.totalorder %s478_s17, 3 }
   0xc   : > { %s558_s25 = scalar_select %p105_p7, %s466_s14, %s107_s21  }
   0xd   : > { %p159_p10 = pnand %p332_p6, %p158_p9 }
   0xe   : > { %p184_p11 = scmp.lt.s32.totalorder (!%p159_p10), %s470_s15, 1  ;;  %s181_s8 = sand.u32 (!%p159_p10), 1, %s462_s13  }
   0xf   : > { %162 = sbr.rel (%p159_p10) target bundleno = 172 (0xac), region = 32  ;;  %s333_s9 = sshll.u32 (!%p159_p10), %s181_s8, 3 }
  0x10   : > { %s336_s10 = sshll.u32 (!%p159_p10), %s470_s15, 7  ;;  %s183_s11 = scalar_lea.vmem (!%p159_p10), [#allocation2], %s333_s9 }
  0x11   : > { %s257_s18 = sshll.u32 (!%p159_p10), %s183_s11, 4  ;;  %s255_s23 = scalar_lea.hbm (!%p159_p10), %s613_s3, %s336_s10  ;;  %s258_s18 = int_to_ptr.vmem [resolvable:$true] %s257_s18 }
  0x12   : > { %s243_s26 = scalar_lea.sflag (!%p159_p10), [#allocation3], %s181_s8  ;;  %s402_s27 = scalar_lea.vmem (!%p159_p10), %s258_s18, 128 }
  0x13   : > { %p403_p12 = scmp.ne.s32.totalorder (!%p159_p10), %s258_s18, %s402_s27  ;;  %s484_s28 = smov (!%p159_p10), [#allocation2]  }
  0x14   : > { %v191_v0 = vld [vmem:[%s611_s1] sm:$0xff]  ;;  %v480_v1 = vmov 0   ;;  %v481_v2 = vmov 1   ;;  %v482_v4 = vmov 2   ;;  %v483_v5 = vmov 3   ;;  %s185_s30 = scalar_select %p184_p11, %s470_s15, 1 }
  0x15   : > { %398 = vset.pattern.permute.xlu0 %v480_v1  ;;  %399 = vset.pattern.permute.xlu1 %v481_v2  ;;  %v192_v3 = vld [vmem:[%s612_s2] sm:$0xff]  ;;  %v199_v6 = vlaneseq  ;;  %vm240_vm0 = vcmask 130048   ;;  %p404_p13 = pnand %p403_p12, %p545_p4  ;;  %s406_s29 = sshll.u32 %s484_s28, 4  ;;  %s407_s29 = int_to_ptr.vmem [resolvable:$false] %s406_s29 }
  0x16   : > { %196 = vperm.xlu0 %398, %v191_v0   ;;  %211 = vperm.xlu1 %399, %v191_v0   ;;  %s334_s4 = sshll.u32 %s185_s30, 2  ;;  %s408_s15 = scalar_lea.vmem %s407_s29, 256 }
  0x17   : > { %v200_v7 = vshrl.u32 %v199_v6, 7  ;;  %s190_s7 = scalar_lea.vmem %s610_s0, %s334_s4  ;;  %p405_p0 = pneg %p404_p13 }
  0x18   : > { %v193_v9 = vld [vmem:[%s190_s7] sm:$0xf]  ;;  %p409_p1 = scmp.lt.s32.totalorder %s258_s18, %s407_s29  ;;  %p410_p2 = scmp.lt.s32.totalorder %s408_s15, %s402_s27 }
  0x19   : > { %v201_v8 = vsub.s32 0, %v200_v7  ;;  %v216_v10 = vsub.s32 1, %v200_v7  ;;  %v226_v11 = vsub.s32 2, %v200_v7  ;;  %v236_v17 = vsub.s32 3, %v200_v7 }
  0x1a   : > { %206 = vperm.xlu0 %398, %v192_v3   ;;  %400 = vset.pattern.permute.xlu1 %v482_v4  ;;  %p411_p3 = por %p410_p2, %p409_p1 }
  0x1b   : > { %221 = vperm.xlu1 %400, %v191_v0   ;;  %v202_v12 = vrot.slane %v193_v9, %v201_v8  ;;  %v217_v15 = vrot.slane %v193_v9, %v216_v10  ;;  %v227_v16 = vrot.slane %v193_v9, %v226_v11  ;;  %v237_v24 = vrot.slane %v193_v9, %v236_v17 }
  0x1c   : > { %p412_p5 = pnand %p411_p3, %p405_p0 }
  0x1e   : > { %401 = vset.pattern.permute.xlu0 %v483_v5 }
  0x1f   : > { %231 = vperm.xlu0 %401, %v191_v0  }
  0x91   : > { %v197_v13 = vpop.permute.xlu0 %196  ;;  %v212_v14 = vpop.permute.xlu1 %211 }
  0x92   : > { %v203_v18 = vmul.f32 %v202_v12, %v197_v13  ;;  %v218_v20 = vmul.f32 %v217_v15, %v212_v14 }
  0x95   : > { %v207_v19 = vpop.permute.xlu0 %206 }
  0x96   : > { %v209_v21 = vadd.f32 %v207_v19, %v203_v18  ;;  %v222_v22 = vpop.permute.xlu1 %221 }
  0x97   : > { %v228_v23 = vmul.f32 %v227_v16, %v222_v22 }
  0x98   : > { %v219_v25 = vadd.f32 %v218_v20, %v209_v21 }
  0x9a   : > { %v229_v26 = vadd.f32 %v228_v23, %v219_v25  ;;  %v232_v27 = vpop.permute.xlu0 %231 }
  0x9b   : > { %v238_v28 = vmul.f32 %v237_v24, %v232_v27 }
  0x9d   : > { %v239_v29 = vadd.f32 %v238_v28, %v229_v26 }
  0x9f   : > { %241 = vst.msk [vmem:[%s183_s11] sm:$0xff] %vm240_vm0, %v239_v29 }
  0xa0   : > { %415 = shalt.err (!%p412_p5)
}
  0xa1   : > { %s416_s30 = scalar_lea.hbm %s255_s23, 128  ;;  %s420_s6 = scalar_lea.hbm %s613_s3, 256 }
  0xa2   : > { %p417_p6 = scmp.ne.s32.totalorder %s255_s23, %s416_s30  ;;  %p421_p10 = scmp.lt.s32.totalorder %s255_s23, %s613_s3 }
  0xa3   : > { %p422_p11 = scmp.lt.s32.totalorder %s420_s6, %s416_s30 }
  0xa4   : > { %p418_p7 = pnand %p417_p6, %p545_p4 }
  0xa5   : > { %p423_p12 = por %p422_p11, %p421_p10 }
  0xa6   : > { %p419_p9 = pneg %p418_p7 }
  0xa8   : > { %p424_p13 = pnand %p423_p12, %p419_p9 }
  0xaa   : > { %427 = shalt.err (!%p424_p13)
}
  0xab   : > { %339 = dma.vmem_to_hbm [thread:$0]  (%p545_p4), %s258_s18, 128, %s255_s23, %s243_s26  }
  0xac PF: > { %p345_p0 = scmp.ge.s32.totalorder %s478_s17, 2  ;;  %s269_s9 = sand.u32 1, %s458_s12  }
  0xad   : > { %s270_s10 = scalar_lea.sflag [#allocation3], %s269_s9 }
  0xae   : > { %p342_p1 = pnand %p345_p0, %p552_p8 }
  0xb0   : > { %p343_p2 = pneg %p342_p1 }
  0xb2   : > { %453 = dma.done.wait (%p343_p2), %s270_s10, 128  }
  0xb3   : > { %455 = vsyncadd (%p343_p2), %s270_s10, 4294967168  ;;  %s16_s17 = sadd.s32 1, %s478_s17   ;;  %s616_s12 = smov %s462_s13 }
  0xb4   : > { %p13_p3 = scmp.ge.s32.totalorder %s16_s17, 4   ;;  %s617_s13 = smov %s466_s14 }
  0xb5   : > { %s618_s14 = smov %s558_s25  ;;  %s619_s15 = smov %s474_s16 }
  0xb6   : > { %s620_s16 = smov %s622_s20  ;;  %15 = sbr.rel (!%p13_p3) target bundleno = 4 (0x4), region = 67 }
  0xbb   :  { %275 = vsyncpa [#allocation3], 1 }
  0xbc   :  { %277 = vsyncpa [#allocation3 + $0x1], 1 }

</bundles_post_ra>
